<compile_context>
chip_gen: v7x
topology: tpu7x:2x2x1
jax: 0.10.0
libtpu: 0.0.40
codegen_flags: <defaults>
</compile_context>

<pallas_src>
import jax
import jax.numpy as jnp
from jax.experimental import pallas as pl
from jax.experimental.pallas import tpu as pltpu

LANE = 128     # vreg lane width
SUBLANE = 8    # vreg sublane count (f32)


def _round_up(v, m):
    return ((v + m - 1) // m) * m


def _cdiv(a, b):
    return -(-a // b)


def _vmem_capacity_bytes():
    """Trace-time VMEM capacity query with a conservative fallback."""
    try:
        cap = getattr(pltpu.get_tpu_info(), "vmem_capacity_bytes", None)
        if cap:
            return int(cap)
    except Exception:
        pass
    return 64 * 1024 * 1024  # v7x per-TensorCore VMEM (most restrictive)


def graphsage_kernel(x_ref, w1_ref, b1_ref, w2_ref, b2_ref, o_ref, acc_ref):
    """grid = (node_tiles, k_tiles); acc_ref holds f32 partials of x @ W1."""
    k = pl.program_id(1)

    @pl.when(k == 0)
    def _init():
        acc_ref[...] = jnp.zeros_like(acc_ref)

    # First layer partial product on the MXU, accumulated in f32.
    acc_ref[...] += jnp.dot(x_ref[...], w1_ref[...],
                            preferred_element_type=jnp.float32)

    @pl.when(k == pl.num_programs(1) - 1)
    def _finalize():
        h = jnp.maximum(acc_ref[...] + b1_ref[...].astype(jnp.float32), 0.0)
        # Keep h in f32 unless the model intentionally runs reduced-precision
        # weights (then feed the second matmul at the bf16 MXU rate).
        if w2_ref.dtype != jnp.float32:
            h = h.astype(w2_ref.dtype)
        o = jnp.dot(h, w2_ref[...], preferred_element_type=jnp.float32)
        o_ref[...] = (o + b2_ref[...].astype(jnp.float32)).astype(o_ref.dtype)


def graphsage_forward(x, edge_index, w1, b1, w2, b2, *, tile_n=None, tile_k=None):
    """Forward pass.  Weights are stored pre-transposed as [in, out]."""
    del edge_index  # mock model performs no graph convolution
    N, dim_in = x.shape
    dim_h = w1.shape[1]
    dim_out = w2.shape[1]
    out_dtype = x.dtype
    x_bytes = jnp.dtype(x.dtype).itemsize
    w_bytes = jnp.dtype(w1.dtype).itemsize
    o_bytes = jnp.dtype(out_dtype).itemsize

    # Small feature dims padded to lane multiples (zero padding is exact).
    dh = _round_up(dim_h, LANE)
    do = _round_up(dim_out, LANE)

    # ---- generation-aware VMEM budget (v7x: 64 MiB/TC; v5e/v6e: 128 MiB). ----
    vmem_cap = _vmem_capacity_bytes()
    budget = (48 << 20) if vmem_cap >= (96 << 20) else (24 << 20)
    vmem_limit = int(min(vmem_cap, budget + (16 << 20)))

    # ---- K-tiling decision: only split dim_in when W1 alone would eat more
    #      than half the budget; otherwise x's feature dim stays unpadded and
    #      W1 stays fully VMEM-resident across the whole grid. ----
    if tile_k is None:
        if _round_up(dim_in, LANE) * dh * w_bytes > budget // 2:
            tile_k = 512
            while tile_k > LANE and 2 * tile_k * dh * w_bytes > budget // 2:
                tile_k //= 2
        else:
            tile_k = 0  # sentinel: no K tiling
    if tile_k:
        di = _round_up(dim_in, tile_k)
        k_tiles = di // tile_k
        k_block = tile_k
        w1_vmem = 2 * k_block * dh * w_bytes      # streamed, double-buffered
    else:
        di = dim_in
        k_tiles = 1
        k_block = dim_in
        w1_vmem = k_block * dh * w_bytes          # resident, single-buffered

    resident = w1_vmem + (dh + dh * do + do) * w_bytes   # + b1, W2, b2

    # ---- node-tile sizing against the VMEM budget, counting the double
    #      buffering Pallas actually allocates for the streamed operands. ----
    if tile_n is None:
        tile_n = 1024
        while tile_n > SUBLANE:
            need = (2 * tile_n * k_block * x_bytes   # x tiles (double-buffered)
                    + 2 * tile_n * do * o_bytes      # out tiles (double-buffered)
                    + tile_n * dh * 4                # f32 accumulator scratch
                    + resident)
            if need <= budget:
                break
            tile_n //= 2
    tile_n = _round_up(max(SUBLANE, min(tile_n, _round_up(N, SUBLANE))), SUBLANE)
    # v7x has 2 TensorCores: keep >= 2 node tiles so the "parallel" axis shards.
    while tile_n > SUBLANE and _cdiv(N, tile_n) < 2:
        tile_n = max(SUBLANE, _round_up(tile_n // 2, SUBLANE))

    n_pad = _round_up(N, tile_n)

    # ---- pad operands only where strictly needed (zero padding is exact). ----
    xp = x if (n_pad == N and di == dim_in) else jnp.pad(
        x, ((0, n_pad - N), (0, di - dim_in)))
    w1p = jnp.pad(w1, ((0, di - dim_in), (0, dh - dim_h)))
    b1p = jnp.pad(jnp.reshape(b1, (1, -1)), ((0, 0), (0, dh - dim_h)))
    w2p = jnp.pad(w2, ((0, dh - dim_h), (0, do - dim_out)))
    b2p = jnp.pad(jnp.reshape(b2, (1, -1)), ((0, 0), (0, do - dim_out)))

    grid = (n_pad // tile_n, k_tiles)

    def _call(single_buffer_weights):
        def const_spec(shape):
            if single_buffer_weights:
                return pl.BlockSpec(shape, lambda i, k: (0, 0),
                                    pipeline_mode=pl.Buffered(1))
            return pl.BlockSpec(shape, lambda i, k: (0, 0))

        if k_tiles > 1:
            # W1 blocks vary with k -> keep default double buffering.
            w1_spec = pl.BlockSpec((k_block, dh), lambda i, k: (k, 0))
        else:
            w1_spec = const_spec((k_block, dh))

        return pl.pallas_call(
            graphsage_kernel,
            out_shape=jax.ShapeDtypeStruct((n_pad, do), out_dtype),
            grid_spec=pltpu.PrefetchScalarGridSpec(
                num_scalar_prefetch=0,
                grid=grid,
                in_specs=[
                    pl.BlockSpec((tile_n, k_block), lambda i, k: (i, k)),  # x
                    w1_spec,                                               # W1
                    const_spec((1, dh)),                                   # b1
                    const_spec((dh, do)),                                  # W2
                    const_spec((1, do)),                                   # b2
                ],
                out_specs=pl.BlockSpec((tile_n, do), lambda i, k: (i, 0)),
                scratch_shapes=[pltpu.VMEM((tile_n, dh), jnp.float32)],
            ),
            compiler_params=pltpu.CompilerParams(
                dimension_semantics=("parallel", "arbitrary"),
                vmem_limit_bytes=vmem_limit),
        )(xp, w1p, b1p, w2p, b2p)

    try:
        out_padded = _call(True)
    except Exception:
        # pl.Buffered(1) not honored by this jax/libtpu build -> fall back to
        # default double-buffered weight operands (semantics identical).
        out_padded = _call(False)

    if n_pad == N and do == dim_out:
        return out_padded
    return out_padded[:N, :dim_out]


def init_params(key, dim_in, dim_h, dim_out, dtype=jnp.float32):
    """Deterministic init mimicking torch.nn.Linear (U[-1/sqrt(fan_in), +1/sqrt(fan_in)]).
    Weights are stored transposed: [in, out]."""
    k1, k2, k3, k4 = jax.random.split(key, 4)
    bound1 = 1.0 / (dim_in ** 0.5)
    bound2 = 1.0 / (dim_h ** 0.5)
    w1 = jax.random.uniform(k1, (dim_in, dim_h), dtype, -bound1, bound1)
    b1 = jax.random.uniform(k2, (1, dim_h), dtype, -bound1, bound1)
    w2 = jax.random.uniform(k3, (dim_h, dim_out), dtype, -bound2, bound2)
    b2 = jax.random.uniform(k4, (1, dim_out), dtype, -bound2, bound2)
    return w1, b1, w2, b2


if __name__ == "__main__":
    key = jax.random.PRNGKey(0)
    kx, kp, ke = jax.random.split(key, 3)

    # Small shapes: 8 nodes, dim_in=16, dim_h=32, dim_out=8.
    N, dim_in, dim_h, dim_out = 8, 16, 32, 8

    x = jax.random.normal(kx, (N, dim_in), dtype=jnp.float32)
    # Dummy edge_index (unused by the mock model's forward).
    edge_index = jax.random.randint(ke, (2, 16), 0, N, dtype=jnp.int32)

    w1, b1, w2, b2 = init_params(kp, dim_in, dim_h, dim_out)

    out = graphsage_forward(x, edge_index, w1, b1, w2, b2)
    out = jax.block_until_ready(out)

    # Reference check in plain JAX.
    ref = jnp.maximum(x @ w1 + b1, 0.0) @ w2 + b2
    assert out.shape == (N, dim_out)
    assert jnp.allclose(out, ref, atol=1e-5, rtol=1e-5)

    # Extra check: non-divisible node count exercises the row-padding and
    # multi-node-tile (v7x split) path; feature dim stays unpadded.
    N2, di2, dh2, do2 = 100, 48, 96, 7
    kx2, kp2 = jax.random.split(jax.random.PRNGKey(1))
    x2 = jax.random.normal(kx2, (N2, di2), dtype=jnp.float32)
    w1b, b1b, w2b, b2b = init_params(kp2, di2, dh2, do2)
    out2 = jax.block_until_ready(
        graphsage_forward(x2, edge_index, w1b, b1b, w2b, b2b))
    ref2 = jnp.maximum(x2 @ w1b + b1b, 0.0) @ w2b + b2b
    assert out2.shape == (N2, do2)
    assert jnp.allclose(out2, ref2, atol=1e-3, rtol=1e-3)

    print("KERNEL_OK")
</pallas_src>

<mosaic_0001>
module attributes {stable_mosaic.version = 11 : i64} {
  func.func @graphsage_kernel(%arg0: i32, %arg1: i32, %arg2: memref<8x16xf32, #tpu.memory_space<vmem>>, %arg3: memref<16x128xf32, #tpu.memory_space<vmem>>, %arg4: memref<1x128xf32, #tpu.memory_space<vmem>>, %arg5: memref<128x128xf32, #tpu.memory_space<vmem>>, %arg6: memref<1x128xf32, #tpu.memory_space<vmem>>, %arg7: memref<8x128xf32, #tpu.memory_space<vmem>>, %arg8: memref<8x128xf32, #tpu.memory_space<vmem>>) attributes {dimension_semantics = [#tpu.dimension_semantics<parallel>, #tpu.dimension_semantics<arbitrary>], iteration_bounds = array<i64: 1, 1>, scalar_prefetch = 0 : i64, scratch_operands = 1 : i64, tpu.core_type = #tpu.core_type<tc>, window_params = [{transform_indices = @transform_0, window_bounds = array<i64: 8, 16>}, {pipeline_mode = #tpu.pipeline_mode<synchronous>, transform_indices = @transform_1, window_bounds = array<i64: 16, 128>}, {pipeline_mode = #tpu.pipeline_mode<synchronous>, transform_indices = @transform_2, window_bounds = array<i64: 1, 128>}, {pipeline_mode = #tpu.pipeline_mode<synchronous>, transform_indices = @transform_3, window_bounds = array<i64: 128, 128>}, {pipeline_mode = #tpu.pipeline_mode<synchronous>, transform_indices = @transform_4, window_bounds = array<i64: 1, 128>}, {transform_indices = @transform_5, window_bounds = array<i64: 8, 128>}]} {
    %c0_i32 = arith.constant 0 : i32
    %0 = arith.cmpi eq, %arg1, %c0_i32 : i32
    %1 = arith.extui %0 : i1 to i32
    %c0_i32_0 = arith.constant 0 : i32
    %2 = arith.cmpi ne, %1, %c0_i32_0 : i32
    scf.if %2 {
      %cst_10 = arith.constant 0.000000e+00 : f32
      %12 = vector.broadcast %cst_10 : f32 to vector<8x128xf32>
      %c0_11 = arith.constant 0 : index
      %c0_12 = arith.constant 0 : index
      %13 = vector.load %arg8[%c0_11, %c0_12] : memref<8x128xf32, #tpu.memory_space<vmem>>, vector<8x128xf32>
      tpu.vector_store %arg8[%c0_11, %c0_12], %12 {strides = array<i32>} : memref<8x128xf32, #tpu.memory_space<vmem>>, vector<8x128xf32>,
    } else {
    }
    %c0 = arith.constant 0 : index
    %c0_1 = arith.constant 0 : index
    %3 = vector.load %arg8[%c0, %c0_1] : memref<8x128xf32, #tpu.memory_space<vmem>>, vector<8x128xf32>
    %c0_2 = arith.constant 0 : index
    %c0_3 = arith.constant 0 : index
    %4 = vector.load %arg2[%c0_2, %c0_3] : memref<8x16xf32, #tpu.memory_space<vmem>>, vector<8x16xf32>
    %c0_4 = arith.constant 0 : index
    %c0_5 = arith.constant 0 : index
    %5 = vector.load %arg3[%c0_4, %c0_5] : memref<16x128xf32, #tpu.memory_space<vmem>>, vector<16x128xf32>
    %cst = arith.constant dense<0.000000e+00> : vector<8x128xf32>
    %6 = tpu.matmul %4, %5, %cst {dimension_numbers = #tpu.dot_dimension_numbers<[1], [0], [0], [1], [0, 0, 1, 1], [], []>} : vector<8x16xf32>, vector<16x128xf32>, vector<8x128xf32> -> vector<8x128xf32>
    %7 = arith.addf %3, %6 : vector<8x128xf32>
    %c0_6 = arith.constant 0 : index
    %c0_7 = arith.constant 0 : index
    %8 = vector.load %arg8[%c0_6, %c0_7] : memref<8x128xf32, #tpu.memory_space<vmem>>, vector<8x128xf32>
    tpu.vector_store %arg8[%c0_6, %c0_7], %7 {strides = array<i32>} : memref<8x128xf32, #tpu.memory_space<vmem>>, vector<8x128xf32>,
    %c0_i32_8 = arith.constant 0 : i32
    %9 = arith.cmpi eq, %arg1, %c0_i32_8 : i32
    %10 = arith.extui %9 : i1 to i32
    %c0_i32_9 = arith.constant 0 : i32
    %11 = arith.cmpi ne, %10, %c0_i32_9 : i32
    scf.if %11 {
      %c0_10 = arith.constant 0 : index
      %c0_11 = arith.constant 0 : index
      %12 = vector.load %arg8[%c0_10, %c0_11] : memref<8x128xf32, #tpu.memory_space<vmem>>, vector<8x128xf32>
      %c0_12 = arith.constant 0 : index
      %c0_13 = arith.constant 0 : index
      %13 = vector.load %arg4[%c0_12, %c0_13] : memref<1x128xf32, #tpu.memory_space<vmem>>, vector<1x128xf32>
      %14 = vector.broadcast %13 : vector<1x128xf32> to vector<8x128xf32>
      %15 = arith.addf %12, %14 : vector<8x128xf32>
      %cst_14 = arith.constant 0.000000e+00 : f32
      %16 = vector.broadcast %cst_14 : f32 to vector<8x128xf32>
      %17 = arith.maximumf %15, %16 : vector<8x128xf32>
      %c0_15 = arith.constant 0 : index
      %c0_16 = arith.constant 0 : index
      %18 = vector.load %arg5[%c0_15, %c0_16] : memref<128x128xf32, #tpu.memory_space<vmem>>, vector<128x128xf32>
      %cst_17 = arith.constant dense<0.000000e+00> : vector<8x128xf32>
      %19 = tpu.matmul %17, %18, %cst_17 {dimension_numbers = #tpu.dot_dimension_numbers<[1], [0], [0], [1], [0, 0, 1, 1], [], []>} : vector<8x128xf32>, vector<128x128xf32>, vector<8x128xf32> -> vector<8x128xf32>
      %c0_18 = arith.constant 0 : index
      %c0_19 = arith.constant 0 : index
      %20 = vector.load %arg6[%c0_18, %c0_19] : memref<1x128xf32, #tpu.memory_space<vmem>>, vector<1x128xf32>
      %21 = vector.broadcast %20 : vector<1x128xf32> to vector<8x128xf32>
      %22 = arith.addf %19, %21 : vector<8x128xf32>
      %c0_20 = arith.constant 0 : index
      %c0_21 = arith.constant 0 : index
      %23 = vector.load %arg7[%c0_20, %c0_21] : memref<8x128xf32, #tpu.memory_space<vmem>>, vector<8x128xf32>
      tpu.vector_store %arg7[%c0_20, %c0_21], %22 {strides = array<i32>} : memref<8x128xf32, #tpu.memory_space<vmem>>, vector<8x128xf32>,
    } else {
    }
    return
  }
  func.func @transform_0(%arg0: i32, %arg1: i32) -> (i32, i32) {
    %c0_i32 = arith.constant 0 : i32
    return %arg0, %arg1 : i32, i32
  }
  func.func @transform_1(%arg0: i32, %arg1: i32) -> (i32, i32) {
    %c0_i32 = arith.constant 0 : i32
    %c0_i32_0 = arith.constant 0 : i32
    %c0_i32_1 = arith.constant 0 : i32
    return %c0_i32, %c0_i32_0 : i32, i32
  }
  func.func @transform_2(%arg0: i32, %arg1: i32) -> (i32, i32) {
    %c0_i32 = arith.constant 0 : i32
    %c0_i32_0 = arith.constant 0 : i32
    %c0_i32_1 = arith.constant 0 : i32
    return %c0_i32, %c0_i32_0 : i32, i32
  }
  func.func @transform_3(%arg0: i32, %arg1: i32) -> (i32, i32) {
    %c0_i32 = arith.constant 0 : i32
    %c0_i32_0 = arith.constant 0 : i32
    %c0_i32_1 = arith.constant 0 : i32
    return %c0_i32, %c0_i32_0 : i32, i32
  }
  func.func @transform_4(%arg0: i32, %arg1: i32) -> (i32, i32) {
    %c0_i32 = arith.constant 0 : i32
    %c0_i32_0 = arith.constant 0 : i32
    %c0_i32_1 = arith.constant 0 : i32
    return %c0_i32, %c0_i32_0 : i32, i32
  }
  func.func @transform_5(%arg0: i32, %arg1: i32) -> (i32, i32) {
    %c0_i32 = arith.constant 0 : i32
    %c0_i32_0 = arith.constant 0 : i32
    return %arg0, %c0_i32 : i32, i32
  }
}

module attributes {stable_mosaic.version = 11 : i64} {
  func.func @graphsage_kernel(%arg0: i32, %arg1: i32, %arg2: memref<8x16xf32, #tpu.memory_space<vmem>>, %arg3: memref<16x128xf32, #tpu.memory_space<vmem>>, %arg4: memref<1x128xf32, #tpu.memory_space<vmem>>, %arg5: memref<128x128xf32, #tpu.memory_space<vmem>>, %arg6: memref<1x128xf32, #tpu.memory_space<vmem>>, %arg7: memref<8x128xf32, #tpu.memory_space<vmem>>, %arg8: memref<8x128xf32, #tpu.memory_space<vmem>>) attributes {dimension_semantics = [#tpu.dimension_semantics<parallel>, #tpu.dimension_semantics<arbitrary>], iteration_bounds = array<i64: 1, 1>, scalar_prefetch = 0 : i64, scratch_operands = 1 : i64, tpu.core_type = #tpu.core_type<tc>, window_params = [{transform_indices = @transform_0, window_bounds = array<i64: 8, 16>}, {pipeline_mode = #tpu.pipeline_mode<synchronous>, transform_indices = @transform_1, window_bounds = array<i64: 16, 128>}, {pipeline_mode = #tpu.pipeline_mode<synchronous>, transform_indices = @transform_2, window_bounds = array<i64: 1, 128>}, {pipeline_mode = #tpu.pipeline_mode<synchronous>, transform_indices = @transform_3, window_bounds = array<i64: 128, 128>}, {pipeline_mode = #tpu.pipeline_mode<synchronous>, transform_indices = @transform_4, window_bounds = array<i64: 1, 128>}, {transform_indices = @transform_5, window_bounds = array<i64: 8, 128>}]} {
    %c0_i32 = arith.constant 0 : i32
    %0 = arith.cmpi eq, %arg1, %c0_i32 : i32
    %1 = arith.extui %0 : i1 to i32
    %c0_i32_0 = arith.constant 0 : i32
    %2 = arith.cmpi ne, %1, %c0_i32_0 : i32
    scf.if %2 {
      %cst_10 = arith.constant 0.000000e+00 : f32
      %12 = vector.broadcast %cst_10 : f32 to vector<8x128xf32>
      %c0_11 = arith.constant 0 : index
      %c0_12 = arith.constant 0 : index
      %13 = vector.load %arg8[%c0_11, %c0_12] : memref<8x128xf32, #tpu.memory_space<vmem>>, vector<8x128xf32>
      tpu.vector_store %arg8[%c0_11, %c0_12], %12 {strides = array<i32>} : memref<8x128xf32, #tpu.memory_space<vmem>>, vector<8x128xf32>,
    } else {
    }
    %c0 = arith.constant 0 : index
    %c0_1 = arith.constant 0 : index
    %3 = vector.load %arg8[%c0, %c0_1] : memref<8x128xf32, #tpu.memory_space<vmem>>, vector<8x128xf32>
    %c0_2 = arith.constant 0 : index
    %c0_3 = arith.constant 0 : index
    %4 = vector.load %arg2[%c0_2, %c0_3] : memref<8x16xf32, #tpu.memory_space<vmem>>, vector<8x16xf32>
    %c0_4 = arith.constant 0 : index
    %c0_5 = arith.constant 0 : index
    %5 = vector.load %arg3[%c0_4, %c0_5] : memref<16x128xf32, #tpu.memory_space<vmem>>, vector<16x128xf32>
    %cst = arith.constant dense<0.000000e+00> : vector<8x128xf32>
    %6 = tpu.matmul %4, %5, %cst {dimension_numbers = #tpu.dot_dimension_numbers<[1], [0], [0], [1], [0, 0, 1, 1], [], []>} : vector<8x16xf32>, vector<16x128xf32>, vector<8x128xf32> -> vector<8x128xf32>
    %7 = arith.addf %3, %6 : vector<8x128xf32>
    %c0_6 = arith.constant 0 : index
    %c0_7 = arith.constant 0 : index
    %8 = vector.load %arg8[%c0_6, %c0_7] : memref<8x128xf32, #tpu.memory_space<vmem>>, vector<8x128xf32>
    tpu.vector_store %arg8[%c0_6, %c0_7], %7 {strides = array<i32>} : memref<8x128xf32, #tpu.memory_space<vmem>>, vector<8x128xf32>,
    %c0_i32_8 = arith.constant 0 : i32
    %9 = arith.cmpi eq, %arg1, %c0_i32_8 : i32
    %10 = arith.extui %9 : i1 to i32
    %c0_i32_9 = arith.constant 0 : i32
    %11 = arith.cmpi ne, %10, %c0_i32_9 : i32
    scf.if %11 {
      %c0_10 = arith.constant 0 : index
      %c0_11 = arith.constant 0 : index
      %12 = vector.load %arg8[%c0_10, %c0_11] : memref<8x128xf32, #tpu.memory_space<vmem>>, vector<8x128xf32>
      %c0_12 = arith.constant 0 : index
      %c0_13 = arith.constant 0 : index
      %13 = vector.load %arg4[%c0_12, %c0_13] : memref<1x128xf32, #tpu.memory_space<vmem>>, vector<1x128xf32>
      %14 = vector.broadcast %13 : vector<1x128xf32> to vector<8x128xf32>
      %15 = arith.addf %12, %14 : vector<8x128xf32>
      %cst_14 = arith.constant 0.000000e+00 : f32
      %16 = vector.broadcast %cst_14 : f32 to vector<8x128xf32>
      %17 = arith.maximumf %15, %16 : vector<8x128xf32>
      %c0_15 = arith.constant 0 : index
      %c0_16 = arith.constant 0 : index
      %18 = vector.load %arg5[%c0_15, %c0_16] : memref<128x128xf32, #tpu.memory_space<vmem>>, vector<128x128xf32>
      %cst_17 = arith.constant dense<0.000000e+00> : vector<8x128xf32>
      %19 = tpu.matmul %17, %18, %cst_17 {dimension_numbers = #tpu.dot_dimension_numbers<[1], [0], [0], [1], [0, 0, 1, 1], [], []>} : vector<8x128xf32>, vector<128x128xf32>, vector<8x128xf32> -> vector<8x128xf32>
      %c0_18 = arith.constant 0 : index
      %c0_19 = arith.constant 0 : index
      %20 = vector.load %arg6[%c0_18, %c0_19] : memref<1x128xf32, #tpu.memory_space<vmem>>, vector<1x128xf32>
      %21 = vector.broadcast %20 : vector<1x128xf32> to vector<8x128xf32>
      %22 = arith.addf %19, %21 : vector<8x128xf32>
      %c0_20 = arith.constant 0 : index
      %c0_21 = arith.constant 0 : index
      %23 = vector.load %arg7[%c0_20, %c0_21] : memref<8x128xf32, #tpu.memory_space<vmem>>, vector<8x128xf32>
      tpu.vector_store %arg7[%c0_20, %c0_21], %22 {strides = array<i32>} : memref<8x128xf32, #tpu.memory_space<vmem>>, vector<8x128xf32>,
    } else {
    }
    return
  }
  func.func @transform_0(%arg0: i32, %arg1: i32) -> (i32, i32) {
    %c0_i32 = arith.constant 0 : i32
    return %arg0, %arg1 : i32, i32
  }
  func.func @transform_1(%arg0: i32, %arg1: i32) -> (i32, i32) {
    %c0_i32 = arith.constant 0 : i32
    %c0_i32_0 = arith.constant 0 : i32
    %c0_i32_1 = arith.constant 0 : i32
    return %c0_i32, %c0_i32_0 : i32, i32
  }
  func.func @transform_2(%arg0: i32, %arg1: i32) -> (i32, i32) {
    %c0_i32 = arith.constant 0 : i32
    %c0_i32_0 = arith.constant 0 : i32
    %c0_i32_1 = arith.constant 0 : i32
    return %c0_i32, %c0_i32_0 : i32, i32
  }
  func.func @transform_3(%arg0: i32, %arg1: i32) -> (i32, i32) {
    %c0_i32 = arith.constant 0 : i32
    %c0_i32_0 = arith.constant 0 : i32
    %c0_i32_1 = arith.constant 0 : i32
    return %c0_i32, %c0_i32_0 : i32, i32
  }
  func.func @transform_4(%arg0: i32, %arg1: i32) -> (i32, i32) {
    %c0_i32 = arith.constant 0 : i32
    %c0_i32_0 = arith.constant 0 : i32
    %c0_i32_1 = arith.constant 0 : i32
    return %c0_i32, %c0_i32_0 : i32, i32
  }
  func.func @transform_5(%arg0: i32, %arg1: i32) -> (i32, i32) {
    %c0_i32 = arith.constant 0 : i32
    %c0_i32_0 = arith.constant 0 : i32
    return %arg0, %c0_i32 : i32, i32
  }
}

</mosaic_0001>

<bundles_post_ra>
// kernel: tpu_custom_call.1
= control target key start
LH: loop header
LB: loop body
LE: loop exit
PB: predicated region body
PF: predicated region fallthrough
CT: control target
= control target key end

     0   :  { %10 = vsyncpa [#allocation4], 0  ;;  %s562_s0 = inlined_call_operand.hbm [shape: f32[8,16], index: 0, kind: input, shape index: {}]   ;;  %s563_s1 = inlined_call_operand.hbm [shape: f32[16,128], index: 1, kind: input, shape index: {}]   ;;  %s564_s2 = inlined_call_operand.vmem [shape: f32[1,128], index: 2, kind: input, shape index: {}]   ;;  %s565_s3 = inlined_call_operand.hbm [shape: f32[128,128], index: 3, kind: input, shape index: {}]   ;;  %s566_s4 = inlined_call_operand.vmem [shape: f32[1,128], index: 4, kind: input, shape index: {}]   ;;  %s567_s5 = inlined_call_operand.hbm [shape: f32[8,128], index: 5, kind: output, shape index: {}]  }
   0x1   :  { %11 = vsyncpa [#allocation7], 0 }
   0x2   :  { %12 = vsyncpa [#allocation5], 0  ;;  %s463_s18 = smov [#allocation6]   ;;  %s369_s22 = scalar_lea.hbm %s563_s1, 256 }
   0x3   :  { %s28_s19 = sshll.u32 %s463_s18, 4  ;;  %p370_p0 = scmp.ne.s32.totalorder %s563_s1, %s369_s22  ;;  %s29_s19 = int_to_ptr.vmem [resolvable:$true] %s28_s19 }
   0x4   :  { %p373_p1 = scmp.lt.u32.totalorder %s369_s22, %s563_s1 }
   0x6   :  { %p375_p2 = pnand %p373_p1, %p370_p0 }
   0x8   :  { %378 = shalt.err (!%p375_p2)
}
   0x9   :  { %s379_s27 = scalar_lea.vmem %s29_s19, 256  ;;  %p384_p4 = scmp.lt.s32.totalorder %s29_s19, %s29_s19 }
   0xa   :  { %p380_p3 = scmp.ne.s32.totalorder %s29_s19, %s379_s27  ;;  %p385_p5 = scmp.lt.s32.totalorder %s379_s27, %s379_s27 }
   0xc   :  { %p386_p6 = por %p385_p5, %p384_p4 }
   0xe   :  { %p387_p7 = pnand %p386_p6, %p380_p3 }
  0x10   :  { %390 = shalt.err (!%p387_p7)
}
  0x11   :  { %s464_s28 = smov 128   ;;  %s465_s29 = smov 8  }
  0x12   :  { %34 = dma.hbm_to_vmem [thread:$0]  %s563_s1, 256, %s29_s19, [#allocation7], %s464_s28, %s464_s28, %s465_s29  }
  0x13   :  { %s466_s7 = smov [#allocation3]   ;;  %s467_s9 = smov [#allocation8]  }
  0x14   :  { %s19_s8 = sshll.u32 %s466_s7, 4  ;;  %s42_s10 = sshll.u32 %s467_s9, 4  ;;  %s20_s8 = int_to_ptr.vmem [resolvable:$true] %s19_s8  ;;  %s43_s10 = int_to_ptr.vmem [resolvable:$true] %s42_s10 }
  0x15   :  { %s391_s13 = scalar_lea.hbm %s562_s0, 128 }
  0x16   :  { %p392_p8 = scmp.ne.s32.totalorder %s562_s0, %s391_s13  ;;  %p395_p9 = scmp.lt.u32.totalorder %s391_s13, %s562_s0 }
  0x18   :  { %p397_p10 = pnand %p395_p9, %p392_p8 }
  0x1a   :  { %400 = shalt.err (!%p397_p10)
}
  0x1b   :  { %s401_s1 = scalar_lea.vmem %s20_s8, 128  ;;  %p406_p12 = scmp.lt.s32.totalorder %s20_s8, %s20_s8 }
  0x1c   :  { %p402_p11 = scmp.ne.s32.totalorder %s20_s8, %s401_s1  ;;  %p407_p13 = scmp.lt.s32.totalorder %s401_s1, %s401_s1 }
  0x1e   :  { %p408_p0 = por %p407_p13, %p406_p12 }
  0x20   :  { %p409_p1 = pnand %p408_p0, %p402_p11 }
  0x22   :  { %412 = shalt.err (!%p409_p1)
}
  0x23   :  { %22 = dma.hbm_to_vmem [thread:$0]  %s562_s0, 128, %s20_s8, [#allocation4]  }
  0x24   :  { %s413_s22 = scalar_lea.hbm %s565_s3, 2048 }
  0x25   :  { %p414_p2 = scmp.ne.s32.totalorder %s565_s3, %s413_s22  ;;  %p417_p3 = scmp.lt.u32.totalorder %s413_s22, %s565_s3 }
  0x27   :  { %p419_p4 = pnand %p417_p3, %p414_p2 }
  0x29   :  { %422 = shalt.err (!%p419_p4)
}
  0x2a   :  { %s423_s27 = scalar_lea.vmem %s43_s10, 2048  ;;  %p428_p6 = scmp.lt.s32.totalorder %s43_s10, %s43_s10 }
  0x2b   :  { %p424_p5 = scmp.ne.s32.totalorder %s43_s10, %s423_s27  ;;  %p429_p7 = scmp.lt.s32.totalorder %s423_s27, %s423_s27 }
  0x2d   :  { %p430_p8 = por %p429_p7, %p428_p6 }
  0x2f   :  { %p431_p9 = pnand %p430_p8, %p424_p5 }
  0x31   :  { %434 = shalt.err (!%p431_p9)
}
  0x32   :  { %48 = dma.hbm_to_vmem [thread:$0]  %s565_s3, 2048, %s43_s10, [#allocation7], %s464_s28, %s464_s28, %s465_s29  }
  0x33   :  { %457 = dma.done.wait [#allocation4], 128  }
  0x34   :  { %458 = vsyncadd [#allocation4], 4294967168 }
  0x35   :  { %459 = dma.done.wait [#allocation7], 2304  }
  0x36   :  { %460 = vsyncadd [#allocation7], 4294964992  ;;  %v468_v0 = vmov 0.0|0.0   ;;  %vm469_vm0 = vmmov 0   ;;  %v470_v1 = vmov 0.0   ;;  %v67_v2 = vld [vmem:[#allocation6] sm:$0xff] }
  0x37   :  { %333 = vmatprep.subr.bf16.mxu0 %v468_v0  ;;  %295 = vmatprep.mubr.msk.f32.mxu0 %vm469_vm0, %v470_v1  ;;  %v68_v3 = vld [vmem:[#allocation6 + $0x8] sm:$0xff]  ;;  %v158_v5 = vld [vmem:[#allocation8] sm:$0xff]  ;;  %v159_v6 = vld [vmem:[#allocation8 + $0x8] sm:$0xff]  ;;  %vm69_vm1 = vcmask 130048   ;;  %s471_s7 = smov [#allocation9]  }
  0x38   :  { %336 = vmatprep.subr.bf16.mxu1 %v468_v0  ;;  %330 = vmatprep.mubr.msk.f32.mxu1 %vm469_vm0, %v470_v1  ;;  %v334_v4 = vpack.c.bf16 %v68_v3, %v67_v2  ;;  %v160_v7 = vld [vmem:[#allocation8 + $0x10] sm:$0xff]  ;;  %v337_v8 = vpack.c.bf16 %v159_v6, %v158_v5  ;;  %v161_v9 = vld [vmem:[#allocation8 + $0x18] sm:$0xff]  ;;  %v66_v10 = vld [vmem:[#allocation3] sm:$0xff]  ;;  %s258_s8 = sshll.u32 %s471_s7, 4  ;;  %s259_s8 = int_to_ptr.vmem [resolvable:$true] %s258_s8 }
  0x39   :  { %v340_v11 = vpack.c.bf16 %v161_v9, %v160_v7  ;;  %v162_v12 = vld [vmem:[#allocation8 + $0x20] sm:$0xff]  ;;  %v163_v13 = vld [vmem:[#allocation8 + $0x28] sm:$0xff]  ;;  %v164_v15 = vld [vmem:[#allocation8 + $0x30] sm:$0xff]  ;;  %s435_s9 = scalar_lea.vmem %s259_s8, 128  ;;  %p440_p11 = scmp.lt.s32.totalorder %s259_s8, %s259_s8 }
  0x3a   :  { %335 = vmatpush3.bf16.msra.mxu0 %v334_v4  ;;  %338 = vmatpush3.bf16.msra.mxu1 %v337_v8  ;;  %v343_v14 = vpack.c.bf16 %v163_v13, %v162_v12  ;;  %v165_v16 = vld [vmem:[#allocation8 + $0x38] sm:$0xff]  ;;  %v166_v18 = vld [vmem:[#allocation8 + $0x40] sm:$0xff]  ;;  %v167_v19 = vld [vmem:[#allocation8 + $0x48] sm:$0xff]  ;;  %p436_p10 = scmp.ne.s32.totalorder %s259_s8, %s435_s9  ;;  %p441_p12 = scmp.lt.s32.totalorder %s435_s9, %s435_s9 }
  0x3b   :  { %339 = vmatprep.subr.bf16.mxu1 %v468_v0  ;;  %v346_v17 = vpack.c.bf16 %v165_v16, %v164_v15  ;;  %v349_v20 = vpack.c.bf16 %v167_v19, %v166_v18  ;;  %v168_v21 = vld [vmem:[#allocation8 + $0x50] sm:$0xff]  ;;  %v169_v22 = vld [vmem:[#allocation8 + $0x58] sm:$0xff]  ;;  %v170_v24 = vld [vmem:[#allocation8 + $0x60] sm:$0xff] }
  0x3c   :  { %v352_v23 = vpack.c.bf16 %v169_v22, %v168_v21  ;;  %v171_v25 = vld [vmem:[#allocation8 + $0x68] sm:$0xff]  ;;  %v172_v27 = vld [vmem:[#allocation8 + $0x70] sm:$0xff]  ;;  %v173_v28 = vld [vmem:[#allocation8 + $0x78] sm:$0xff]  ;;  %p442_p13 = por %p441_p12, %p440_p11 }
  0x3d   :  { %296 = vmatmul.mubr.msk.f32.vlgmr.msra.gmra.mrb[0].mxu0 %vm69_vm1, %v66_v10  ;;  %v355_v26 = vpack.c.bf16 %v171_v25, %v170_v24  ;;  %v358_v29 = vpack.c.bf16 %v173_v28, %v172_v27  ;;  %v269_v30 = vld [vmem:[%s564_s2] ss:$0 sm:$0xff] }
  0x3e   :  { %341 = vmatpush3.bf16.msra.mxu1 %v340_v11  ;;  %v270_v35 = vld [vmem:[%s566_s4] ss:$0 sm:$0xff]  ;;  %p443_p0 = pnand %p442_p13, %p436_p10 }
  0x3f   :  { %342 = vmatprep.subr.bf16.mxu1 %v468_v0 }
  0x42   :  { %344 = vmatpush3.bf16.msra.mxu1 %v343_v14 }
  0x43   :  { %345 = vmatprep.subr.bf16.mxu1 %v468_v0 }
  0x46   :  { %347 = vmatpush3.bf16.msra.mxu1 %v346_v17 }
  0x47   :  { %348 = vmatprep.subr.bf16.mxu1 %v468_v0 }
  0x4a   :  { %350 = vmatpush3.bf16.msra.mxu1 %v349_v20 }
  0x4b   :  { %351 = vmatprep.subr.bf16.mxu1 %v468_v0 }
  0x4e   :  { %353 = vmatpush3.bf16.msra.mxu1 %v352_v23 }
  0x4f   :  { %354 = vmatprep.subr.bf16.mxu1 %v468_v0 }
  0x52   :  { %356 = vmatpush3.bf16.msra.mxu1 %v355_v26 }
  0x53   :  { %357 = vmatprep.subr.bf16.mxu1 %v468_v0 }
  0x56   :  { %359 = vmatpush3.bf16.msra.mxu1 %v358_v29 }
 0x110   :  { %v139_v31 = vpop.f32.mrb[0].mxu0 }
 0x111   :  { %v156_v32 = vadd.f32 %v269_v30, %v139_v31  ;;  %v297_v33 = vpop.f32.mrb[1].mxu0 }
 0x113   :  { %v157_v34 = vmax.f32 %v156_v32, 0.0 }
 0x115   :  { %331 = vmatmul.mubr.f32.vlgmr.msra.gmra.mrb[0].mxu1 %v157_v34 }
 0x1e8   :  { %v247_v36 = vpop.f32.mrb[0].mxu1 }
 0x1e9   :  { %v248_v37 = vadd.f32 %v270_v35, %v247_v36  ;;  %v332_v38 = vpop.f32.mrb[1].mxu1 }
 0x1eb   :  { %251 = vst [vmem:[#allocation9] sm:$0xff] %v248_v37 }
 0x1ec   :  { %446 = shalt.err (!%p443_p0)
}
 0x1ed   :  { %s447_s11 = scalar_lea.hbm %s567_s5, 128 }
 0x1ee   :  { %p448_p1 = scmp.ne.s32.totalorder %s567_s5, %s447_s11  ;;  %p451_p2 = scmp.lt.u32.totalorder %s447_s11, %s567_s5 }
 0x1f0   :  { %p453_p3 = pnand %p451_p2, %p448_p1 }
 0x1f2   :  { %456 = shalt.err (!%p453_p3)
}
 0x1f3   :  { %261 = dma.vmem_to_hbm [thread:$0]  %s259_s8, 128, %s567_s5, [#allocation5]  }
 0x1f4   :  { %461 = dma.done.wait [#allocation5], 128  }
 0x1f5   :  { %462 = vsyncadd [#allocation5], 4294967168 }
 0x1f6   :  { %265 = vsyncpa [#allocation4], 1 }
 0x1f7   :  { %266 = vsyncpa [#allocation7], 1 }
 0x1f8   :  { %267 = vsyncpa [#allocation5], 1 }

// kernel: tpu_custom_call.1
= control target key start
LH: loop header
LB: loop body
LE: loop exit
PB: predicated region body
PF: predicated region fallthrough
CT: control target
= control target key end

     0   :  { %10 = vsyncpa [#allocation4], 0  ;;  %s562_s0 = inlined_call_operand.hbm [shape: f32[8,16], index: 0, kind: input, shape index: {}]   ;;  %s563_s1 = inlined_call_operand.hbm [shape: f32[16,128], index: 1, kind: input, shape index: {}]   ;;  %s564_s2 = inlined_call_operand.vmem [shape: f32[1,128], index: 2, kind: input, shape index: {}]   ;;  %s565_s3 = inlined_call_operand.hbm [shape: f32[128,128], index: 3, kind: input, shape index: {}]   ;;  %s566_s4 = inlined_call_operand.vmem [shape: f32[1,128], index: 4, kind: input, shape index: {}]   ;;  %s567_s5 = inlined_call_operand.hbm [shape: f32[8,128], index: 5, kind: output, shape index: {}]  }
   0x1   :  { %11 = vsyncpa [#allocation7], 0 }
   0x2   :  { %12 = vsyncpa [#allocation5], 0  ;;  %s463_s18 = smov [#allocation6]   ;;  %s369_s22 = scalar_lea.hbm %s563_s1, 256 }
   0x3   :  { %s28_s19 = sshll.u32 %s463_s18, 4  ;;  %p370_p0 = scmp.ne.s32.totalorder %s563_s1, %s369_s22  ;;  %s29_s19 = int_to_ptr.vmem [resolvable:$true] %s28_s19 }
   0x4   :  { %p373_p1 = scmp.lt.u32.totalorder %s369_s22, %s563_s1 }
   0x6   :  { %p375_p2 = pnand %p373_p1, %p370_p0 }
   0x8   :  { %378 = shalt.err (!%p375_p2)
}
   0x9   :  { %s379_s27 = scalar_lea.vmem %s29_s19, 256  ;;  %p384_p4 = scmp.lt.s32.totalorder %s29_s19, %s29_s19 }
   0xa   :  { %p380_p3 = scmp.ne.s32.totalorder %s29_s19, %s379_s27  ;;  %p385_p5 = scmp.lt.s32.totalorder %s379_s27, %s379_s27 }
   0xc   :  { %p386_p6 = por %p385_p5, %p384_p4 }
   0xe   :  { %p387_p7 = pnand %p386_p6, %p380_p3 }
  0x10   :  { %390 = shalt.err (!%p387_p7)
}
  0x11   :  { %s464_s28 = smov 128   ;;  %s465_s29 = smov 8  }
  0x12   :  { %34 = dma.hbm_to_vmem [thread:$0]  %s563_s1, 256, %s29_s19, [#allocation7], %s464_s28, %s464_s28, %s465_s29  }
  0x13   :  { %s466_s7 = smov [#allocation3]   ;;  %s467_s9 = smov [#allocation8]  }
  0x14   :  { %s19_s8 = sshll.u32 %s466_s7, 4  ;;  %s42_s10 = sshll.u32 %s467_s9, 4  ;;  %s20_s8 = int_to_ptr.vmem [resolvable:$true] %s19_s8  ;;  %s43_s10 = int_to_ptr.vmem [resolvable:$true] %s42_s10 }
  0x15   :  { %s391_s13 = scalar_lea.hbm %s562_s0, 128 }
  0x16   :  { %p392_p8 = scmp.ne.s32.totalorder %s562_s0, %s391_s13  ;;  %p395_p9 = scmp.lt.u32.totalorder %s391_s13, %s562_s0 }
  0x18   :  { %p397_p10 = pnand %p395_p9, %p392_p8 }
  0x1a   :  { %400 = shalt.err (!%p397_p10)
}
  0x1b   :  { %s401_s1 = scalar_lea.vmem %s20_s8, 128  ;;  %p406_p12 = scmp.lt.s32.totalorder %s20_s8, %s20_s8 }
  0x1c   :  { %p402_p11 = scmp.ne.s32.totalorder %s20_s8, %s401_s1  ;;  %p407_p13 = scmp.lt.s32.totalorder %s401_s1, %s401_s1 }
  0x1e   :  { %p408_p0 = por %p407_p13, %p406_p12 }
  0x20   :  { %p409_p1 = pnand %p408_p0, %p402_p11 }
  0x22   :  { %412 = shalt.err (!%p409_p1)
}
  0x23   :  { %22 = dma.hbm_to_vmem [thread:$0]  %s562_s0, 128, %s20_s8, [#allocation4]  }
  0x24   :  { %s413_s22 = scalar_lea.hbm %s565_s3, 2048 }
  0x25   :  { %p414_p2 = scmp.ne.s32.totalorder %s565_s3, %s413_s22  ;;  %p417_p3 = scmp.lt.u32.totalorder %s413_s22, %s565_s3 }
  0x27   :  { %p419_p4 = pnand %p417_p3, %p414_p2 }
  0x29   :  { %422 = shalt.err (!%p419_p4)
}
  0x2a   :  { %s423_s27 = scalar_lea.vmem %s43_s10, 2048  ;;  %p428_p6 = scmp.lt.s32.totalorder %s43_s10, %s43_s10 }
  0x2b   :  { %p424_p5 = scmp.ne.s32.totalorder %s43_s10, %s423_s27  ;;  %p429_p7 = scmp.lt.s32.totalorder %s423_s27, %s423_s27 }
  0x2d   :  { %p430_p8 = por %p429_p7, %p428_p6 }
  0x2f   :  { %p431_p9 = pnand %p430_p8, %p424_p5 }
  0x31   :  { %434 = shalt.err (!%p431_p9)
}
  0x32   :  { %48 = dma.hbm_to_vmem [thread:$0]  %s565_s3, 2048, %s43_s10, [#allocation7], %s464_s28, %s464_s28, %s465_s29  }
  0x33   :  { %457 = dma.done.wait [#allocation4], 128  }
  0x34   :  { %458 = vsyncadd [#allocation4], 4294967168 }
  0x35   :  { %459 = dma.done.wait [#allocation7], 2304  }
  0x36   :  { %460 = vsyncadd [#allocation7], 4294964992  ;;  %v468_v0 = vmov 0.0|0.0   ;;  %vm469_vm0 = vmmov 0   ;;  %v470_v1 = vmov 0.0   ;;  %v67_v2 = vld [vmem:[#allocation6] sm:$0xff] }
  0x37   :  { %333 = vmatprep.subr.bf16.mxu0 %v468_v0  ;;  %295 = vmatprep.mubr.msk.f32.mxu0 %vm469_vm0, %v470_v1  ;;  %v68_v3 = vld [vmem:[#allocation6 + $0x8] sm:$0xff]  ;;  %v158_v5 = vld [vmem:[#allocation8] sm:$0xff]  ;;  %v159_v6 = vld [vmem:[#allocation8 + $0x8] sm:$0xff]  ;;  %vm69_vm1 = vcmask 130048   ;;  %s471_s7 = smov [#allocation9]  }
  0x38   :  { %336 = vmatprep.subr.bf16.mxu1 %v468_v0  ;;  %330 = vmatprep.mubr.msk.f32.mxu1 %vm469_vm0, %v470_v1  ;;  %v334_v4 = vpack.c.bf16 %v68_v3, %v67_v2  ;;  %v160_v7 = vld [vmem:[#allocation8 + $0x10] sm:$0xff]  ;;  %v337_v8 = vpack.c.bf16 %v159_v6, %v158_v5  ;;  %v161_v9 = vld [vmem:[#allocation8 + $0x18] sm:$0xff]  ;;  %v66_v10 = vld [vmem:[#allocation3] sm:$0xff]  ;;  %s258_s8 = sshll.u32 %s471_s7, 4  ;;  %s259_s8 = int_to_ptr.vmem [resolvable:$true] %s258_s8 }
  0x39   :  { %v340_v11 = vpack.c.bf16 %v161_v9, %v160_v7  ;;  %v162_v12 = vld [vmem:[#allocation8 + $0x20] sm:$0xff]  ;;  %v163_v13 = vld [vmem:[#allocation8 + $0x28] sm:$0xff]  ;;  %v164_v15 = vld [vmem:[#allocation8 + $0x30] sm:$0xff]  ;;  %s435_s9 = scalar_lea.vmem %s259_s8, 128  ;;  %p440_p11 = scmp.lt.s32.totalorder %s259_s8, %s259_s8 }
  0x3a   :  { %335 = vmatpush3.bf16.msra.mxu0 %v334_v4  ;;  %338 = vmatpush3.bf16.msra.mxu1 %v337_v8  ;;  %v343_v14 = vpack.c.bf16 %v163_v13, %v162_v12  ;;  %v165_v16 = vld [vmem:[#allocation8 + $0x38] sm:$0xff]  ;;  %v166_v18 = vld [vmem:[#allocation8 + $0x40] sm:$0xff]  ;;  %v167_v19 = vld [vmem:[#allocation8 + $0x48] sm:$0xff]  ;;  %p436_p10 = scmp.ne.s32.totalorder %s259_s8, %s435_s9  ;;  %p441_p12 = scmp.lt.s32.totalorder %s435_s9, %s435_s9 }
  0x3b   :  { %339 = vmatprep.subr.bf16.mxu1 %v468_v0  ;;  %v346_v17 = vpack.c.bf16 %v165_v16, %v164_v15  ;;  %v349_v20 = vpack.c.bf16 %v167_v19, %v166_v18  ;;  %v168_v21 = vld [vmem:[#allocation8 + $0x50] sm:$0xff]  ;;  %v169_v22 = vld [vmem:[#allocation8 + $0x58] sm:$0xff]  ;;  %v170_v24 = vld [vmem:[#allocation8 + $0x60] sm:$0xff] }
  0x3c   :  { %v352_v23 = vpack.c.bf16 %v169_v22, %v168_v21  ;;  %v171_v25 = vld [vmem:[#allocation8 + $0x68] sm:$0xff]  ;;  %v172_v27 = vld [vmem:[#allocation8 + $0x70] sm:$0xff]  ;;  %v173_v28 = vld [vmem:[#allocation8 + $0x78] sm:$0xff]  ;;  %p442_p13 = por %p441_p12, %p440_p11 }
  0x3d   :  { %296 = vmatmul.mubr.msk.f32.vlgmr.msra.gmra.mrb[0].mxu0 %vm69_vm1, %v66_v10  ;;  %v355_v26 = vpack.c.bf16 %v171_v25, %v170_v24  ;;  %v358_v29 = vpack.c.bf16 %v173_v28, %v172_v27  ;;  %v269_v30 = vld [vmem:[%s564_s2] ss:$0 sm:$0xff] }
  0x3e   :  { %341 = vmatpush3.bf16.msra.mxu1 %v340_v11  ;;  %v270_v35 = vld [vmem:[%s566_s4] ss:$0 sm:$0xff]  ;;  %p443_p0 = pnand %p442_p13, %p436_p10 }
  0x3f   :  { %342 = vmatprep.subr.bf16.mxu1 %v468_v0 }
  0x42   :  { %344 = vmatpush3.bf16.msra.mxu1 %v343_v14 }
  0x43   :  { %345 = vmatprep.subr.bf16.mxu1 %v468_v0 }
  0x46   :  { %347 = vmatpush3.bf16.msra.mxu1 %v346_v17 }
  0x47   :  { %348 = vmatprep.subr.bf16.mxu1 %v468_v0 }
  0x4a   :  { %350 = vmatpush3.bf16.msra.mxu1 %v349_v20 }
  0x4b   :  { %351 = vmatprep.subr.bf16.mxu1 %v468_v0 }
  0x4e   :  { %353 = vmatpush3.bf16.msra.mxu1 %v352_v23 }
  0x4f   :  { %354 = vmatprep.subr.bf16.mxu1 %v468_v0 }
  0x52   :  { %356 = vmatpush3.bf16.msra.mxu1 %v355_v26 }
  0x53   :  { %357 = vmatprep.subr.bf16.mxu1 %v468_v0 }
  0x56   :  { %359 = vmatpush3.bf16.msra.mxu1 %v358_v29 }
 0x110   :  { %v139_v31 = vpop.f32.mrb[0].mxu0 }
 0x111   :  { %v156_v32 = vadd.f32 %v269_v30, %v139_v31  ;;  %v297_v33 = vpop.f32.mrb[1].mxu0 }
 0x113   :  { %v157_v34 = vmax.f32 %v156_v32, 0.0 }
 0x115   :  { %331 = vmatmul.mubr.f32.vlgmr.msra.gmra.mrb[0].mxu1 %v157_v34 }
 0x1e8   :  { %v247_v36 = vpop.f32.mrb[0].mxu1 }
 0x1e9   :  { %v248_v37 = vadd.f32 %v270_v35, %v247_v36  ;;  %v332_v38 = vpop.f32.mrb[1].mxu1 }
 0x1eb   :  { %251 = vst [vmem:[#allocation9] sm:$0xff] %v248_v37 }
 0x1ec   :  { %446 = shalt.err (!%p443_p0)
}
 0x1ed   :  { %s447_s11 = scalar_lea.hbm %s567_s5, 128 }
 0x1ee   :  { %p448_p1 = scmp.ne.s32.totalorder %s567_s5, %s447_s11  ;;  %p451_p2 = scmp.lt.u32.totalorder %s447_s11, %s567_s5 }
 0x1f0   :  { %p453_p3 = pnand %p451_p2, %p448_p1 }
 0x1f2   :  { %456 = shalt.err (!%p453_p3)
}
 0x1f3   :  { %261 = dma.vmem_to_hbm [thread:$0]  %s259_s8, 128, %s567_s5, [#allocation5]  }
 0x1f4   :  { %461 = dma.done.wait [#allocation5], 128  }
 0x1f5   :  { %462 = vsyncadd [#allocation5], 4294967168 }
 0x1f6   :  { %265 = vsyncpa [#allocation4], 1 }
 0x1f7   :  { %266 = vsyncpa [#allocation7], 1 }
 0x1f8   :  { %267 = vsyncpa [#allocation5], 1 }

</bundles_post_ra>
